<compile_context>
chip_gen: v7x
topology: tpu7x:2x2x1
jax: 0.10.0
libtpu: 0.0.40
codegen_flags: <defaults>
</compile_context>

<pallas_src>
import jax
import jax.numpy as jnp
from jax.experimental import pallas as pl
from jax.experimental.pallas import tpu as pltpu


def _round_up(x, m):
    return (x + m - 1) // m * m


def _cdiv(a, b):
    return -(-a // b)


def _sublane_align(dtype):
    # rows per packed sublane: 8 for 4-byte, 16 for 2-byte, 32 for 1-byte dtypes.
    return max(8, 32 // jnp.dtype(dtype).itemsize)


def _usable_vmem_bytes():
    cap = 64 << 20  # conservative default (v7x per-TensorCore VMEM)
    try:
        info = pltpu.get_tpu_info()
        cap = int(getattr(info, "vmem_capacity_bytes", cap))
    except Exception:
        pass
    # leave headroom for compiler-internal scratch / materialized temporaries
    return max(32 << 20, cap - (16 << 20))


def _choose_tm(M, tm_target, tm_cap, align):
    """Row-tile size: cdiv-based (minimal padding), sublane-aligned, VMEM-capped,
    preferring >=2 grid steps so the parallel row axis can use both v7x TCs."""
    tm_cap = max(align, (tm_cap // align) * align)
    tm = max(align, (min(tm_target, tm_cap) // align) * align)
    n = max(_cdiv(M, tm), 2 if M > align else 1)
    tm = min(tm, _round_up(_cdiv(M, n), align))
    tm = max(align, min(tm, tm_cap))
    n = _cdiv(M, tm)
    return tm, n


# ----------------------------------------------------------------------------
# Kernels
# ----------------------------------------------------------------------------
def _fusenet_kernel_resident(p_ref, q_ref, w_ref, b_ref, o_ref):
    # p/q: (tm, Hp) activation tiles; w: (Hp, Hp) resident [in, out] weight in
    # the MXU feed dtype (bf16 for an f32 model); b: (1, Hp) pre-doubled f32 bias.
    p = p_ref[...]
    q = q_ref[...]
    # sigmoid(qW + b + pW + b) == sigmoid((p + q) W + 2b): one MXU pass.
    # TODO(synk): for fp16 models compute (p + q) in f32 before the cast to
    # avoid overflow; bf16/f32 are fine as-is.
    s = (p + q).astype(w_ref.dtype)
    logits = jnp.dot(s, w_ref[...], preferred_element_type=jnp.float32) + b_ref[...]
    mid = jax.nn.sigmoid(logits)                       # f32 on the EUP
    d = p.astype(jnp.float32) - q.astype(jnp.float32)  # single f32 blend temp
    o_ref[...] = (q.astype(jnp.float32) + mid * d).astype(o_ref.dtype)


def _fusenet_kernel_coltiled(p_ref, q_ref, w_ref, b_ref, o_ref, s_ref):
    # Large-H fallback: output dim tiled with a second grid axis.
    # p/q row tiles stay resident across j; s = (p + q) cached once per row tile.
    j = pl.program_id(1)
    tn = o_ref.shape[-1]

    @pl.when(j == 0)
    def _():
        s_ref[...] = (p_ref[...] + q_ref[...]).astype(s_ref.dtype)

    logits = jnp.dot(s_ref[...], w_ref[...],
                     preferred_element_type=jnp.float32) + b_ref[...]
    mid = jax.nn.sigmoid(logits)
    col = pl.multiple_of(j * tn, 128)
    pj = p_ref[:, pl.ds(col, tn)].astype(jnp.float32)
    qj = q_ref[:, pl.ds(col, tn)].astype(jnp.float32)
    o_ref[...] = (qj + mid * (pj - qj)).astype(o_ref.dtype)


# ----------------------------------------------------------------------------
# Wrappers
# ----------------------------------------------------------------------------
def fusenet_prepare_params(weight, bias, *, matmul_dtype=None):
    """One-time parameter prep (hoist / cache this outside the hot forward path).

    Returns (w_t, b2): [in, out] weight padded to a lane-dense multiple of 128
    in the MXU feed dtype, and the pre-doubled f32 bias (1, Hp).
    """
    H = weight.shape[0]
    Hp = _round_up(H, 128)
    if matmul_dtype is None:
        # The MXU is bf16-native on v5e/v6e/v7x: feed bf16 when the model is f32.
        matmul_dtype = jnp.bfloat16 if weight.dtype == jnp.float32 else weight.dtype
    w_t = weight.T.astype(matmul_dtype)
    if Hp != H:
        w_t = jnp.pad(w_t, ((0, Hp - H), (0, Hp - H)))
    b2 = 2.0 * bias.astype(jnp.float32)
    b2 = jnp.pad(b2, (0, Hp - H)).reshape(1, Hp)
    return w_t, b2


def fusenet_forward_prepared(p, q, w_t, b2, *, tm=512, tn=None,
                             force_column_tiling=False):
    orig_shape = p.shape
    H = orig_shape[-1]
    Hp = w_t.shape[0]

    p2d = p.reshape(-1, H)
    q2d = q.reshape(-1, H)
    M = p2d.shape[0]

    align = _sublane_align(p.dtype)
    in_itm = jnp.dtype(p.dtype).itemsize
    out_itm = in_itm
    mm_itm = jnp.dtype(w_t.dtype).itemsize
    slack = 2 << 20
    usable = _usable_vmem_bytes()

    # Resident-weight budget: single-buffered weight + tiny bias; per-row cost
    # covers double-buffered p/q/out tiles and the f32 intermediates
    # (s, logits/mid, d, q_f32, out_f32) materialized in the epilogue.
    fixed_res = Hp * Hp * mm_itm + 8 * Hp * 4 + slack
    per_row_res = Hp * (4 * in_itm + 2 * out_itm + mm_itm + 16)
    use_resident = (not force_column_tiling) and \
        (usable - fixed_res) >= per_row_res * align

    if use_resident:
        tm_cap = (usable - fixed_res) // per_row_res
        tm_eff, grid_m = _choose_tm(M, tm, tm_cap, align)
        grid = (grid_m,)
        tn_eff = Hp
        vmem_need = fixed_res + per_row_res * tm_eff
        dim_sem = ("parallel",)
    else:
        # Large-H fallback: tile the output dim; weight blocks (Hp, tn).
        if tn is None:
            tn_eff = 128
            cand = 256
            while cand <= min(Hp, 512):
                if Hp % cand == 0 and 2 * Hp * cand * mm_itm <= usable // 3:
                    tn_eff = cand
                cand += 128
        else:
            tn_eff = tn
        assert Hp % tn_eff == 0 and tn_eff % 128 == 0
        fixed_ct = 2 * Hp * tn_eff * mm_itm + 2 * 8 * tn_eff * 4 + slack
        per_row_ct = Hp * (4 * in_itm + mm_itm) + tn_eff * (2 * out_itm + 12)
        tm_cap = max(align, (usable - fixed_ct) // per_row_ct)
        tm_eff, grid_m = _choose_tm(M, tm, tm_cap, align)
        grid = (grid_m, Hp // tn_eff)
        vmem_need = fixed_ct + per_row_ct * tm_eff
        dim_sem = ("parallel", "arbitrary")

    Mp = grid_m * tm_eff
    if Mp != M or Hp != H:
        p2d = jnp.pad(p2d, ((0, Mp - M), (0, Hp - H)))
        q2d = jnp.pad(q2d, ((0, Mp - M), (0, Hp - H)))

    vmem_limit = int(min(usable, max(32 << 20, vmem_need)))
    cost = pl.CostEstimate(
        flops=2 * Mp * Hp * Hp + 8 * Mp * Hp,
        transcendentals=Mp * Hp,
        bytes_accessed=3 * Mp * Hp * in_itm + Hp * Hp * mm_itm + Hp * 4,
    )
    compiler_params = pltpu.CompilerParams(
        dimension_semantics=dim_sem, vmem_limit_bytes=vmem_limit)
    out_shape = jax.ShapeDtypeStruct((Mp, Hp), p.dtype)

    if use_resident:
        def _build(single_buffer_const):
            if single_buffer_const:
                w_spec = pl.BlockSpec((Hp, Hp), lambda i: (0, 0),
                                      pipeline_mode=pl.Buffered(1))
                b_spec = pl.BlockSpec((1, Hp), lambda i: (0, 0),
                                      pipeline_mode=pl.Buffered(1))
            else:
                w_spec = pl.BlockSpec((Hp, Hp), lambda i: (0, 0))
                b_spec = pl.BlockSpec((1, Hp), lambda i: (0, 0))
            return pl.pallas_call(
                _fusenet_kernel_resident,
                out_shape=out_shape,
                grid_spec=pltpu.PrefetchScalarGridSpec(
                    num_scalar_prefetch=0,
                    grid=grid,
                    in_specs=[
                        pl.BlockSpec((tm_eff, Hp), lambda i: (i, 0)),  # p tile
                        pl.BlockSpec((tm_eff, Hp), lambda i: (i, 0)),  # q tile
                        w_spec,                                        # weight (resident)
                        b_spec,                                        # 2*bias (resident)
                    ],
                    out_specs=pl.BlockSpec((tm_eff, Hp), lambda i: (i, 0)),
                ),
                compiler_params=compiler_params,
                cost_estimate=cost,
            )
        try:
            out = _build(True)(p2d, q2d, w_t, b2)
        except Exception:
            # TODO(synk): pl.Buffered(1) not supported on this jax version;
            # fall back to default double buffering of the resident operands.
            out = _build(False)(p2d, q2d, w_t, b2)
    else:
        out = pl.pallas_call(
            _fusenet_kernel_coltiled,
            out_shape=out_shape,
            grid_spec=pltpu.PrefetchScalarGridSpec(
                num_scalar_prefetch=0,
                grid=grid,
                in_specs=[
                    pl.BlockSpec((tm_eff, Hp), lambda i, j: (i, 0)),   # p row tile
                    pl.BlockSpec((tm_eff, Hp), lambda i, j: (i, 0)),   # q row tile
                    pl.BlockSpec((Hp, tn_eff), lambda i, j: (0, j)),   # weight col block
                    pl.BlockSpec((1, tn_eff), lambda i, j: (0, j)),    # 2*bias col block
                ],
                out_specs=pl.BlockSpec((tm_eff, tn_eff), lambda i, j: (i, j)),
                scratch_shapes=[pltpu.VMEM((tm_eff, Hp), w_t.dtype)],
            ),
            compiler_params=compiler_params,
            cost_estimate=cost,
        )(p2d, q2d, w_t, b2)

    if Mp != M or Hp != H:
        out = out[:M, :H]
    return out.reshape(orig_shape)


def fusenet_forward(p, q, weight, bias, *, tm=512, tn=None, matmul_dtype=None,
                    force_column_tiling=False):
    """FuseNet forward. In real use cache fusenet_prepare_params across calls."""
    w_t, b2 = fusenet_prepare_params(weight, bias, matmul_dtype=matmul_dtype)
    return fusenet_forward_prepared(p, q, w_t, b2, tm=tm, tn=tn,
                                    force_column_tiling=force_column_tiling)


def fusenet_reference(p, q, weight, bias):
    lq = q @ weight.T + bias
    lp = p @ weight.T + bias
    mid = jax.nn.sigmoid(lq + lp)
    return p * mid + q * (1.0 - mid)


if __name__ == "__main__":
    batch, seq, hidden = 2, 8, 32
    key = jax.random.PRNGKey(0)
    kp, kq, kw, kb = jax.random.split(key, 4)

    p = jax.random.normal(kp, (batch, seq, hidden), dtype=jnp.float32)
    q = jax.random.normal(kq, (batch, seq, hidden), dtype=jnp.float32)
    weight = jax.random.normal(kw, (hidden, hidden), dtype=jnp.float32) * 0.1
    bias = jax.random.normal(kb, (hidden,), dtype=jnp.float32) * 0.1

    ref = fusenet_reference(p, q, weight, bias)

    # 1) exact-precision path (f32 MXU feed): strict tolerance.
    out_f32 = jax.block_until_ready(
        fusenet_forward(p, q, weight, bias, matmul_dtype=jnp.float32))
    assert out_f32.shape == (batch, seq, hidden)
    assert jnp.allclose(out_f32, ref, atol=1e-5, rtol=1e-5), "f32 path mismatch"

    # 2) default fast path: bf16 MXU feed for an f32 model (looser tolerance).
    out_bf = jax.block_until_ready(fusenet_forward(p, q, weight, bias))
    assert jnp.allclose(out_bf, ref, atol=5e-2, rtol=5e-2), "bf16-feed path mismatch"

    # 3) large-H fallback (2-D grid, output dim tiled), forced so multiple
    #    column blocks and the (p+q) scratch reuse are exercised.
    hidden2 = 320
    kp2, kq2, kw2, kb2 = jax.random.split(jax.random.PRNGKey(1), 4)
    p2 = jax.random.normal(kp2, (batch, seq, hidden2), dtype=jnp.float32)
    q2 = jax.random.normal(kq2, (batch, seq, hidden2), dtype=jnp.float32)
    w2 = jax.random.normal(kw2, (hidden2, hidden2), dtype=jnp.float32) * 0.05
    b2v = jax.random.normal(kb2, (hidden2,), dtype=jnp.float32) * 0.05
    ref2 = fusenet_reference(p2, q2, w2, b2v)
    out2 = jax.block_until_ready(
        fusenet_forward(p2, q2, w2, b2v, matmul_dtype=jnp.float32,
                        force_column_tiling=True, tn=128))
    assert jnp.allclose(out2, ref2, atol=1e-4, rtol=1e-4), "column-tiled path mismatch"

    print("KERNEL_OK")
</pallas_src>

<mosaic_0001>
module attributes {stable_mosaic.version = 11 : i64} {
  func.func @_fusenet_kernel_resident(%arg0: i32, %arg1: memref<8x128xf32, #tpu.memory_space<vmem>>, %arg2: memref<8x128xf32, #tpu.memory_space<vmem>>, %arg3: memref<128x128xf32, #tpu.memory_space<vmem>>, %arg4: memref<1x128xf32, #tpu.memory_space<vmem>>, %arg5: memref<8x128xf32, #tpu.memory_space<vmem>>) attributes {dimension_semantics = [#tpu.dimension_semantics<parallel>], iteration_bounds = array<i64: 2>, scalar_prefetch = 0 : i64, scratch_operands = 0 : i64, tpu.core_type = #tpu.core_type<tc>, window_params = [{transform_indices = @transform_0, window_bounds = array<i64: 8, 128>}, {transform_indices = @transform_1, window_bounds = array<i64: 8, 128>}, {pipeline_mode = #tpu.pipeline_mode<synchronous>, transform_indices = @transform_2, window_bounds = array<i64: 128, 128>}, {pipeline_mode = #tpu.pipeline_mode<synchronous>, transform_indices = @transform_3, window_bounds = array<i64: 1, 128>}, {transform_indices = @transform_4, window_bounds = array<i64: 8, 128>}]} {
    %c0 = arith.constant 0 : index
    %c0_0 = arith.constant 0 : index
    %0 = vector.load %arg1[%c0, %c0_0] : memref<8x128xf32, #tpu.memory_space<vmem>>, vector<8x128xf32>
    %c0_1 = arith.constant 0 : index
    %c0_2 = arith.constant 0 : index
    %1 = vector.load %arg2[%c0_1, %c0_2] : memref<8x128xf32, #tpu.memory_space<vmem>>, vector<8x128xf32>
    %2 = arith.addf %0, %1 : vector<8x128xf32>
    %c0_3 = arith.constant 0 : index
    %c0_4 = arith.constant 0 : index
    %3 = vector.load %arg3[%c0_3, %c0_4] : memref<128x128xf32, #tpu.memory_space<vmem>>, vector<128x128xf32>
    %cst = arith.constant dense<0.000000e+00> : vector<8x128xf32>
    %4 = tpu.matmul %2, %3, %cst {dimension_numbers = #tpu.dot_dimension_numbers<[1], [0], [0], [1], [0, 0, 1, 1], [], []>} : vector<8x128xf32>, vector<128x128xf32>, vector<8x128xf32> -> vector<8x128xf32>
    %c0_5 = arith.constant 0 : index
    %c0_6 = arith.constant 0 : index
    %5 = vector.load %arg4[%c0_5, %c0_6] : memref<1x128xf32, #tpu.memory_space<vmem>>, vector<1x128xf32>
    %6 = vector.broadcast %5 : vector<1x128xf32> to vector<8x128xf32>
    %7 = arith.addf %4, %6 : vector<8x128xf32>
    %8 = arith.negf %7 : vector<8x128xf32>
    %9 = math.exp %8 : vector<8x128xf32>
    %cst_7 = arith.constant 1.000000e+00 : f32
    %10 = vector.broadcast %cst_7 : f32 to vector<8x128xf32>
    %11 = arith.addf %10, %9 : vector<8x128xf32>
    %12 = arith.divf %10, %11 : vector<8x128xf32>
    %13 = arith.subf %0, %1 : vector<8x128xf32>
    %14 = arith.mulf %12, %13 : vector<8x128xf32>
    %15 = arith.addf %1, %14 : vector<8x128xf32>
    %c0_8 = arith.constant 0 : index
    %c0_9 = arith.constant 0 : index
    %16 = vector.load %arg5[%c0_8, %c0_9] : memref<8x128xf32, #tpu.memory_space<vmem>>, vector<8x128xf32>
    tpu.vector_store %arg5[%c0_8, %c0_9], %15 {strides = array<i32>} : memref<8x128xf32, #tpu.memory_space<vmem>>, vector<8x128xf32>,
    return
  }
  func.func @transform_0(%arg0: i32) -> (i32, i32) {
    %c0_i32 = arith.constant 0 : i32
    %c0_i32_0 = arith.constant 0 : i32
    return %arg0, %c0_i32 : i32, i32
  }
  func.func @transform_1(%arg0: i32) -> (i32, i32) {
    %c0_i32 = arith.constant 0 : i32
    %c0_i32_0 = arith.constant 0 : i32
    return %arg0, %c0_i32 : i32, i32
  }
  func.func @transform_2(%arg0: i32) -> (i32, i32) {
    %c0_i32 = arith.constant 0 : i32
    %c0_i32_0 = arith.constant 0 : i32
    %c0_i32_1 = arith.constant 0 : i32
    return %c0_i32, %c0_i32_0 : i32, i32
  }
  func.func @transform_3(%arg0: i32) -> (i32, i32) {
    %c0_i32 = arith.constant 0 : i32
    %c0_i32_0 = arith.constant 0 : i32
    %c0_i32_1 = arith.constant 0 : i32
    return %c0_i32, %c0_i32_0 : i32, i32
  }
  func.func @transform_4(%arg0: i32) -> (i32, i32) {
    %c0_i32 = arith.constant 0 : i32
    %c0_i32_0 = arith.constant 0 : i32
    return %arg0, %c0_i32 : i32, i32
  }
}

module attributes {stable_mosaic.version = 11 : i64} {
  func.func @_fusenet_kernel_resident(%arg0: i32, %arg1: memref<8x128xf32, #tpu.memory_space<vmem>>, %arg2: memref<8x128xf32, #tpu.memory_space<vmem>>, %arg3: memref<128x128xf32, #tpu.memory_space<vmem>>, %arg4: memref<1x128xf32, #tpu.memory_space<vmem>>, %arg5: memref<8x128xf32, #tpu.memory_space<vmem>>) attributes {dimension_semantics = [#tpu.dimension_semantics<parallel>], iteration_bounds = array<i64: 2>, scalar_prefetch = 0 : i64, scratch_operands = 0 : i64, tpu.core_type = #tpu.core_type<tc>, window_params = [{transform_indices = @transform_0, window_bounds = array<i64: 8, 128>}, {transform_indices = @transform_1, window_bounds = array<i64: 8, 128>}, {pipeline_mode = #tpu.pipeline_mode<synchronous>, transform_indices = @transform_2, window_bounds = array<i64: 128, 128>}, {pipeline_mode = #tpu.pipeline_mode<synchronous>, transform_indices = @transform_3, window_bounds = array<i64: 1, 128>}, {transform_indices = @transform_4, window_bounds = array<i64: 8, 128>}]} {
    %c0 = arith.constant 0 : index
    %c0_0 = arith.constant 0 : index
    %0 = vector.load %arg1[%c0, %c0_0] : memref<8x128xf32, #tpu.memory_space<vmem>>, vector<8x128xf32>
    %c0_1 = arith.constant 0 : index
    %c0_2 = arith.constant 0 : index
    %1 = vector.load %arg2[%c0_1, %c0_2] : memref<8x128xf32, #tpu.memory_space<vmem>>, vector<8x128xf32>
    %2 = arith.addf %0, %1 : vector<8x128xf32>
    %c0_3 = arith.constant 0 : index
    %c0_4 = arith.constant 0 : index
    %3 = vector.load %arg3[%c0_3, %c0_4] : memref<128x128xf32, #tpu.memory_space<vmem>>, vector<128x128xf32>
    %cst = arith.constant dense<0.000000e+00> : vector<8x128xf32>
    %4 = tpu.matmul %2, %3, %cst {dimension_numbers = #tpu.dot_dimension_numbers<[1], [0], [0], [1], [0, 0, 1, 1], [], []>} : vector<8x128xf32>, vector<128x128xf32>, vector<8x128xf32> -> vector<8x128xf32>
    %c0_5 = arith.constant 0 : index
    %c0_6 = arith.constant 0 : index
    %5 = vector.load %arg4[%c0_5, %c0_6] : memref<1x128xf32, #tpu.memory_space<vmem>>, vector<1x128xf32>
    %6 = vector.broadcast %5 : vector<1x128xf32> to vector<8x128xf32>
    %7 = arith.addf %4, %6 : vector<8x128xf32>
    %8 = arith.negf %7 : vector<8x128xf32>
    %9 = math.exp %8 : vector<8x128xf32>
    %cst_7 = arith.constant 1.000000e+00 : f32
    %10 = vector.broadcast %cst_7 : f32 to vector<8x128xf32>
    %11 = arith.addf %10, %9 : vector<8x128xf32>
    %12 = arith.divf %10, %11 : vector<8x128xf32>
    %13 = arith.subf %0, %1 : vector<8x128xf32>
    %14 = arith.mulf %12, %13 : vector<8x128xf32>
    %15 = arith.addf %1, %14 : vector<8x128xf32>
    %c0_8 = arith.constant 0 : index
    %c0_9 = arith.constant 0 : index
    %16 = vector.load %arg5[%c0_8, %c0_9] : memref<8x128xf32, #tpu.memory_space<vmem>>, vector<8x128xf32>
    tpu.vector_store %arg5[%c0_8, %c0_9], %15 {strides = array<i32>} : memref<8x128xf32, #tpu.memory_space<vmem>>, vector<8x128xf32>,
    return
  }
  func.func @transform_0(%arg0: i32) -> (i32, i32) {
    %c0_i32 = arith.constant 0 : i32
    %c0_i32_0 = arith.constant 0 : i32
    return %arg0, %c0_i32 : i32, i32
  }
  func.func @transform_1(%arg0: i32) -> (i32, i32) {
    %c0_i32 = arith.constant 0 : i32
    %c0_i32_0 = arith.constant 0 : i32
    return %arg0, %c0_i32 : i32, i32
  }
  func.func @transform_2(%arg0: i32) -> (i32, i32) {
    %c0_i32 = arith.constant 0 : i32
    %c0_i32_0 = arith.constant 0 : i32
    %c0_i32_1 = arith.constant 0 : i32
    return %c0_i32, %c0_i32_0 : i32, i32
  }
  func.func @transform_3(%arg0: i32) -> (i32, i32) {
    %c0_i32 = arith.constant 0 : i32
    %c0_i32_0 = arith.constant 0 : i32
    %c0_i32_1 = arith.constant 0 : i32
    return %c0_i32, %c0_i32_0 : i32, i32
  }
  func.func @transform_4(%arg0: i32) -> (i32, i32) {
    %c0_i32 = arith.constant 0 : i32
    %c0_i32_0 = arith.constant 0 : i32
    return %arg0, %c0_i32 : i32, i32
  }
}

</mosaic_0001>

<bundles_post_ra>
// kernel: tpu_custom_call.1
= control target key start
LH: loop header
LB: loop body
LE: loop exit
PB: predicated region body
PF: predicated region fallthrough
CT: control target
= control target key end

     0   :  { %s1092_s0 = inlined_call_operand.hbm [shape: f32[16,128], index: 0, kind: input, shape index: {}]   ;;  %s1093_s1 = inlined_call_operand.hbm [shape: f32[16,128], index: 1, kind: input, shape index: {}]   ;;  %s1094_s2 = inlined_call_operand.hbm [shape: f32[128,128], index: 2, kind: input, shape index: {}]   ;;  %s1095_s3 = inlined_call_operand.vmem [shape: f32[1,128], index: 3, kind: input, shape index: {}]   ;;  %s1096_s4 = inlined_call_operand.hbm [shape: f32[16,128], index: 4, kind: output, shape index: {}]  }
   0x1   :  { %1101 = sst [smem:[#allocation13_spill]] %s1094_s2 }
   0x2   :  { %9 = vsyncpa [#allocation3], 0 }
   0x3   :  { %11 = vsyncpa [#allocation3 + $0x1], 0 }
   0x4   :  { %12 = vsyncpa [#allocation6], 0 }
   0x5   :  { %14 = vsyncpa [#allocation6 + $0x1], 0 }
   0x6   :  { %15 = vsyncpa [#allocation4], 0 }
   0x7   :  { %17 = vsyncpa [#allocation4 + $0x1], 0  ;;  %s850_s15 = smov 0   ;;  %s852_s16 = smov 0  }
   0x8   :  { %s854_s17 = smov 0   ;;  %s856_s18 = smov 0  }
   0x9 LB: > { %s871_s19 = sadd.s32 4294967295, %s814_s18   ;;  %s486_s20 = sadd.s32 4294967294, %s814_s18   ;;  %s814_s18 = sphi %s856_s18, %s1120_s18   ;;  %s810_s17 = sphi %s854_s17, %s1119_s17   ;;  %s806_s16 = sphi %s852_s16, %s1118_s16   ;;  %s802_s15 = sphi %s850_s15, %s1117_s15  }
   0xa   : > { %p43_p0 = scmp.ne.s32.totalorder %s806_s16, %s802_s15  ;;  %p1097_p1 = scmp.eq.s32.totalorder %s871_s19, 0 }
   0xb   : > { %p141_p3 = scmp.eq.s32.totalorder %s486_s20, 1  ;;  %p487_p5 = scmp.ge.s32.totalorder %s814_s18, 1 }
   0xc   : > { %p880_p4 = por %p1097_p1, %p43_p0  ;;  %p148_p7 = scmp.lt.s32.totalorder %s814_s18, 3 }
   0xd   : > { %p885_p6 = por %p141_p3, %p43_p0  ;;  %s816_s24 = smov [#allocation7]  }
   0xe   : > { %s1102_s21 = scalar_select %p880_p4, 1, 0 }
   0xf   : > { %s1103_s22 = scalar_select %p885_p6, 1, 0 }
  0x10   : > { %p890_p8 = pnand %p487_p5, %p148_p7  ;;  %s160_s25 = sshll.u32 %s816_s24, 4  ;;  %s894_s25 = int_to_ptr.vmem [resolvable:$true] %s160_s25 }
  0x11   : > { %s906_s27 = sadd.s32 1, %s814_s18   ;;  %s30_s28 = sadd.s32 1, %s810_s17 }
  0x12   : > { %s1104_s23 = scalar_select %p890_p8, 1, 0 }
  0x13   : > { %p591_p9 = pneg %p890_p8  ;;  %s27_s29 = ssub.s32 %s814_s18, %s906_s27 }
  0x14   : > { %s1106_s2 = sld [smem:[#allocation13_spill]] }
  0x15   : > { %p901_p11 = pnand %p591_p9, %p1097_p1 }
  0x17   : > { %p654_p13 = pneg %p901_p11 }
  0x1a   : > { %s652_s6 = scalar_lea.hbm %s1106_s2, 2048 }
  0x1b   : > { %p653_p12 = scmp.ne.s32.totalorder %s1106_s2, %s652_s6  ;;  %p659_p5 = scmp.lt.u32.totalorder %s652_s6, %s1106_s2 }
  0x1d   : > { %p655_p0 = pnand %p654_p13, %p653_p12 }
  0x1f   : > { %p656_p3 = pneg %p655_p0 }
  0x21   : > { %p661_p7 = pnand %p659_p5, %p656_p3 }
  0x23   : > { %664 = shalt.err (!%p661_p7)
}
  0x24   : > { %s665_s11 = scalar_lea.vmem %s894_s25, 2048  ;;  %p673_p2 = scmp.lt.s32.totalorder %s894_s25, %s894_s25 }
  0x25   : > { %p666_p9 = scmp.ne.s32.totalorder %s894_s25, %s665_s11  ;;  %p674_p6 = scmp.lt.s32.totalorder %s665_s11, %s665_s11 }
  0x27   : > { %p668_p10 = pnand %p666_p9, %p654_p13  ;;  %p675_p4 = por %p674_p6, %p673_p2 }
  0x29   : > { %p669_p1 = pneg %p668_p10 }
  0x2b   : > { %p676_p8 = pnand %p675_p4, %p669_p1 }
  0x2d   : > { %679 = shalt.err (!%p676_p8)
}
  0x2e   : > { %s817_s12 = smov 128   ;;  %s818_s13 = smov 8  }
  0x2f   : > { %594 = dma.hbm_to_vmem [thread:$0]  (!%p901_p11), %s1106_s2, 2048, %s894_s25, [#allocation6], %s817_s12, %s817_s12, %s818_s13  }
  0x30   : > { %p28_p2 = scmp.eq.s32.totalorder %s27_s29, 0  ;;  %p37_p1 = scmp.ne.s32.totalorder %s810_s17, %s806_s16 }
  0x31   : > { %p38_p4 = scmp.eq.s32.totalorder %s814_s18, 0  ;;  %p607_p6 = scmp.lt.s32.totalorder %s814_s18, 2 }
  0x32   : > { %s937_s24 = scalar_select %p28_p2, %s810_s17, %s30_s28  }
  0x33   : > { %p39_p8 = por %p38_p4, %p37_p1  ;;  %p1107_p10 = scmp.eq.s32.totalorder %s871_s19, 1 }
  0x34   : > { %s177_s5 = sand.u32 1, %s810_s17   ;;  %s491_s6 = sshll.u32 %s814_s18, 7 }
  0x35   : > { %p941_p12 = por %p1107_p10, %p37_p1  ;;  %s947_s7 = sshll.u32 %s177_s5, 3 }
  0x36   : > { %s952_s25 = scalar_lea.hbm %s1092_s0, %s491_s6  ;;  %s181_s28 = scalar_lea.vmem [#allocation2], %s947_s7 }
  0x37   : > { %s1108_s30 = scalar_select %p941_p12, 1, 0 }
  0x38   : > { %s188_s29 = sshll.u32 %s181_s28, 4  ;;  %p955_p11 = pnand %p607_p6, %p39_p8  ;;  %s959_s29 = int_to_ptr.vmem [resolvable:$true] %s188_s29 }
  0x39   : > { %s964_s12 = scalar_lea.hbm %s1093_s1, %s491_s6  ;;  %s178_s13 = scalar_lea.sflag [#allocation3], %s177_s5 }
  0x3a   : > { %s680_s14 = scalar_lea.hbm %s952_s25, 128  ;;  %p682_p0 = pneg %p955_p11 }
  0x3b   : > { %p681_p13 = scmp.ne.s32.totalorder %s952_s25, %s680_s14  ;;  %s685_s8 = scalar_lea.hbm %s1092_s0, 256 }
  0x3c   : > { %p686_p7 = scmp.lt.u32.totalorder %s952_s25, %s1092_s0  ;;  %p687_p9 = scmp.lt.u32.totalorder %s685_s8, %s680_s14 }
  0x3d   : > { %p683_p3 = pnand %p682_p0, %p681_p13  ;;  %p689_p1 = scmp.lt.u32.totalorder %s680_s14, %s952_s25 }
  0x3e   : > { %p688_p2 = por %p687_p9, %p686_p7 }
  0x3f   : > { %p684_p5 = pneg %p683_p3 }
  0x40   : > { %p690_p4 = por %p689_p1, %p688_p2 }
  0x42   : > { %p691_p6 = pnand %p690_p4, %p684_p5 }
  0x44   : > { %694 = shalt.err (!%p691_p6)
}
  0x45   : > { %s695_s5 = scalar_lea.vmem %s959_s29, 128  ;;  %s819_s6 = smov [#allocation2]  }
  0x46   : > { %p696_p8 = scmp.ne.s32.totalorder %s959_s29, %s695_s5  ;;  %s700_s10 = sshll.u32 %s819_s6, 4  ;;  %s701_s10 = int_to_ptr.vmem [resolvable:$false] %s700_s10 }
  0x47   : > { %s702_s2 = scalar_lea.vmem %s701_s10, 256  ;;  %p703_p3 = scmp.lt.s32.totalorder %s959_s29, %s701_s10 }
  0x48   : > { %p698_p10 = pnand %p696_p8, %p682_p0  ;;  %p704_p7 = scmp.lt.s32.totalorder %s702_s2, %s695_s5 }
  0x4a   : > { %p699_p13 = pneg %p698_p10  ;;  %p705_p9 = por %p704_p7, %p703_p3 }
  0x4c   : > { %p706_p2 = pnand %p705_p9, %p699_p13 }
  0x4e   : > { %709 = shalt.err (!%p706_p2)
}
  0x4f   : > { %598 = dma.hbm_to_vmem [thread:$0]  (!%p955_p11), %s952_s25, 128, %s959_s29, %s178_s13  }
  0x50   : > { %s195_s11 = sand.u32 1, %s814_s18   ;;  %s199_s14 = scalar_lea.vmem [#allocation5], %s947_s7 }
  0x51   : > { %s206_s20 = sshll.u32 %s199_s14, 4  ;;  %s196_s26 = scalar_lea.sflag [#allocation6], %s195_s11  ;;  %s207_s20 = int_to_ptr.vmem [resolvable:$true] %s206_s20 }
  0x52   : > { %s710_s8 = scalar_lea.hbm %s964_s12, 128  ;;  %s715_s6 = scalar_lea.hbm %s1093_s1, 256 }
  0x53   : > { %p711_p5 = scmp.ne.s32.totalorder %s964_s12, %s710_s8  ;;  %p716_p6 = scmp.lt.u32.totalorder %s964_s12, %s1093_s1 }
  0x54   : > { %p717_p8 = scmp.lt.u32.totalorder %s715_s6, %s710_s8  ;;  %p719_p13 = scmp.lt.u32.totalorder %s710_s8, %s964_s12 }
  0x55   : > { %p713_p1 = pnand %p711_p5, %p682_p0 }
  0x56   : > { %p718_p10 = por %p717_p8, %p716_p6 }
  0x57   : > { %p714_p4 = pneg %p713_p1 }
  0x58   : > { %p720_p3 = por %p719_p13, %p718_p10 }
  0x5a   : > { %p721_p7 = pnand %p720_p3, %p714_p4 }
  0x5c   : > { %724 = shalt.err (!%p721_p7)
}
  0x5d   : > { %s725_s7 = scalar_lea.vmem %s207_s20, 128  ;;  %s820_s25 = smov [#allocation5]  }
  0x5e   : > { %p726_p9 = scmp.ne.s32.totalorder %s207_s20, %s725_s7  ;;  %s730_s29 = sshll.u32 %s820_s25, 4  ;;  %s731_s29 = int_to_ptr.vmem [resolvable:$false] %s730_s29 }
  0x5f   : > { %s732_s13 = scalar_lea.vmem %s731_s29, 256  ;;  %p733_p1 = scmp.lt.s32.totalorder %s207_s20, %s731_s29 }
  0x60   : > { %p728_p2 = pnand %p726_p9, %p682_p0  ;;  %p734_p12 = scmp.lt.s32.totalorder %s732_s13, %s725_s7 }
  0x62   : > { %p729_p5 = pneg %p728_p2  ;;  %p735_p6 = por %p734_p12, %p733_p1 }
  0x64   : > { %p736_p8 = pnand %p735_p6, %p729_p5 }
  0x66   : > { %739 = shalt.err (!%p736_p8)
}
  0x67   : > { %601 = dma.hbm_to_vmem [thread:$0]  (!%p955_p11), %s964_s12, 128, %s207_s20, %s196_s26  }
  0x68   : > { %p1110_p4 = scmp.ne.s32.totalorder %s1104_s23, 0 }
  0x69   : > { %s1015_s11 = sand.u32 (!%p1110_p4), 1, %s806_s16   ;;  %p1111_p12 = scmp.ne.s32.totalorder (!%p1110_p4), %s1102_s21, 0 }
  0x6a   : > { %215 = sbr.rel (%p1110_p4) target bundleno = 412 (0x19c), region = 36  ;;  %s1018_s14 = sshll.u32 (!%p1110_p4), %s1015_s11, 3 }
  0x6b   : > { %s218_s8 = scalar_lea.sflag (!%p1110_p4), [#allocation3], %s1015_s11  ;;  %s221_s28 = scalar_lea.vmem (!%p1110_p4), [#allocation2], %s1018_s14 }
  0x71   : > { %785 = dma.done.wait (%p1111_p12), %s218_s8, 128  }
  0x72   : > { %787 = vsyncadd (%p1111_p12), %s218_s8, 4294967168  ;;  %s226_s23 = sand.u32 1, %s871_s19   ;;  %s230_s12 = scalar_lea.vmem [#allocation5], %s1018_s14 }
  0x73   : > { %s227_s9 = scalar_lea.sflag [#allocation6], %s226_s23 }
  0x74   : > { %789 = dma.done.wait (%p1111_p12), %s227_s9, 128  }
  0x75   : > { %791 = vsyncadd (%p1111_p12), %s227_s9, 4294967168  ;;  %p1112_p11 = scmp.eq.s32.totalorder %s871_s19, 0 }
  0x77   : > { %793 = dma.done.wait (%p1112_p11), [#allocation6], 2048   ;;  %p1113_p0 = pmov %p1112_p11 }
  0x78   : > { %v821_v0 = vmov 0.0|0.0   ;;  %vm822_vm0 = vmmov 0   ;;  %v823_v1 = vmov 0.0   ;;  %v267_v2 = vld [vmem:[#allocation7] sm:$0xff]  ;;  %v268_v3 = vld [vmem:[#allocation7 + $0x8] sm:$0xff]  ;;  %v269_v4 = vld [vmem:[#allocation7 + $0x10] sm:$0xff] }
  0x79   : > { %795 = vsyncadd (%p1113_p0), [#allocation6], 4294965248  ;;  %557 = vmatprep.subr.bf16.mxu0 %v821_v0  ;;  %554 = vmatprep.mubr.msk.f32.mxu0 %vm822_vm0, %v823_v1  ;;  %v558_v5 = vpack.c.bf16 %v268_v3, %v267_v2  ;;  %v270_v6 = vld [vmem:[#allocation7 + $0x18] sm:$0xff]  ;;  %v271_v8 = vld [vmem:[#allocation7 + $0x20] sm:$0xff]  ;;  %s502_s26 = sshll.u32 %s871_s19, 7  ;;  %s263_s5 = scalar_lea.vmem [#allocation8], %s1018_s14 }
  0x7a   : > { %v561_v7 = vpack.c.bf16 %v270_v6, %v269_v4  ;;  %v272_v9 = vld [vmem:[#allocation7 + $0x28] sm:$0xff]  ;;  %v273_v11 = vld [vmem:[#allocation7 + $0x30] sm:$0xff]  ;;  %v274_v12 = vld [vmem:[#allocation7 + $0x38] sm:$0xff]  ;;  %s384_s6 = sshll.u32 %s263_s5, 4  ;;  %s1048_s7 = scalar_lea.hbm %s1096_s4, %s502_s26  ;;  %s1050_s6 = int_to_ptr.vmem [resolvable:$true] %s384_s6 }
  0x7b   : > { %559 = vmatpush3.bf16.msra.mxu0 %v558_v5  ;;  %v564_v10 = vpack.c.bf16 %v272_v9, %v271_v8  ;;  %v567_v13 = vpack.c.bf16 %v274_v12, %v273_v11  ;;  %v275_v14 = vld [vmem:[#allocation7 + $0x40] sm:$0xff]  ;;  %v276_v15 = vld [vmem:[#allocation7 + $0x48] sm:$0xff]  ;;  %v277_v17 = vld [vmem:[#allocation7 + $0x50] sm:$0xff]  ;;  %s371_s25 = scalar_lea.sflag [#allocation4], %s1015_s11  ;;  %s740_s29 = scalar_lea.vmem %s1050_s6, 128 }
  0x7c   : > { %560 = vmatprep.subr.bf16.mxu0 %v821_v0  ;;  %v570_v16 = vpack.c.bf16 %v276_v15, %v275_v14  ;;  %v278_v18 = vld [vmem:[#allocation7 + $0x58] sm:$0xff]  ;;  %v279_v20 = vld [vmem:[#allocation7 + $0x60] sm:$0xff]  ;;  %v280_v21 = vld [vmem:[#allocation7 + $0x68] sm:$0xff]  ;;  %p741_p10 = scmp.ne.s32.totalorder %s1050_s6, %s740_s29  ;;  %p1114_p13 = scmp.ne.s32.totalorder %s1108_s30, 0 }
  0x7d   : > { %v573_v19 = vpack.c.bf16 %v278_v18, %v277_v17  ;;  %v576_v22 = vpack.c.bf16 %v280_v21, %v279_v20  ;;  %v281_v23 = vld [vmem:[#allocation7 + $0x70] sm:$0xff]  ;;  %v282_v24 = vld [vmem:[#allocation7 + $0x78] sm:$0xff]  ;;  %v264_v26 = vld [vmem:[%s221_s28] sm:$0xff]  ;;  %s824_s19 = smov [#allocation8]  }
  0x7e   : > { %v579_v25 = vpack.c.bf16 %v282_v24, %v281_v23  ;;  %v265_v27 = vld [vmem:[%s230_s12] sm:$0xff]  ;;  %v499_v29 = vld [vmem:[%s1095_s3] ss:$0 sm:$0xff]  ;;  %p742_p3 = pnand %p741_p10, %p1114_p13  ;;  %s744_s13 = sshll.u32 %s824_s19, 4  ;;  %s745_s13 = int_to_ptr.vmem [resolvable:$false] %s744_s13 }
  0x7f   : > { %562 = vmatpush3.bf16.msra.mxu0 %v561_v7  ;;  %v266_v28 = vadd.f32 %v265_v27, %v264_v26  ;;  %v366_v36 = vsub.f32 %v264_v26, %v265_v27  ;;  %s746_s14 = scalar_lea.vmem %s745_s13, 256  ;;  %p747_p9 = scmp.lt.s32.totalorder %s1050_s6, %s745_s13 }
  0x80   : > { %563 = vmatprep.subr.bf16.mxu0 %v821_v0  ;;  %p743_p7 = pneg %p742_p3  ;;  %p748_p2 = scmp.lt.s32.totalorder %s746_s14, %s740_s29 }
  0x82   : > { %p749_p5 = por %p748_p2, %p747_p9 }
  0x83   : > { %565 = vmatpush3.bf16.msra.mxu0 %v564_v10 }
  0x84   : > { %566 = vmatprep.subr.bf16.mxu0 %v821_v0  ;;  %p750_p1 = pnand %p749_p5, %p743_p7 }
  0x87   : > { %568 = vmatpush3.bf16.msra.mxu0 %v567_v13 }
  0x88   : > { %569 = vmatprep.subr.bf16.mxu0 %v821_v0 }
  0x8b   : > { %571 = vmatpush3.bf16.msra.mxu0 %v570_v16 }
  0x8c   : > { %572 = vmatprep.subr.bf16.mxu0 %v821_v0 }
  0x8f   : > { %574 = vmatpush3.bf16.msra.mxu0 %v573_v19 }
  0x90   : > { %575 = vmatprep.subr.bf16.mxu0 %v821_v0 }
  0x93   : > { %577 = vmatpush3.bf16.msra.mxu0 %v576_v22 }
  0x94   : > { %578 = vmatprep.subr.bf16.mxu0 %v821_v0 }
  0x97   : > { %580 = vmatpush3.bf16.msra.mxu0 %v579_v25 }
  0x9a   : > { %555 = vmatmul.mubr.f32.vlgmr.msra.gmra.mrb[0].mxu0 %v266_v28 }
 0x16d   : > { %v356_v30 = vpop.f32.mrb[0].mxu0 }
 0x16e   : > { %v357_v31 = vadd.f32 %v499_v29, %v356_v30  ;;  %v556_v32 = vpop.f32.mrb[1].mxu0 }
 0x170   : > { %v500_v33 = vmul.f32 -1.442695, %v357_v31 }
 0x172   : > { %648 = vpow2.f32 %v500_v33 }
 0x17c   : > { %v649_v34 = vpop.eup %648 }
 0x17d   : > { %v363_v35 = vadd.f32 1.0, %v649_v34 }
 0x17f   : > { %650 = vrcp.f32 %v363_v35 }
 0x189   : > { %v651_v37 = vpop.eup %650 }
 0x18a   : > { %v367_v38 = vmul.f32 %v651_v37, %v366_v36 }
 0x18c   : > { %v368_v39 = vadd.f32 %v367_v38, %v265_v27 }
 0x18e   : > { %369 = vst [vmem:[%s263_s5] sm:$0xff] %v368_v39 }
 0x18f   : > { %753 = shalt.err (!%p750_p1)
}
 0x190   : > { %s754_s11 = scalar_lea.hbm %s1048_s7, 128  ;;  %s758_s23 = scalar_lea.hbm %s1096_s4, 256 }
 0x191   : > { %p755_p6 = scmp.ne.s32.totalorder %s1048_s7, %s754_s11  ;;  %p759_p12 = scmp.lt.u32.totalorder %s1048_s7, %s1096_s4 }
 0x192   : > { %p760_p11 = scmp.lt.u32.totalorder %s758_s23, %s754_s11  ;;  %p762_p10 = scmp.lt.u32.totalorder %s754_s11, %s1048_s7 }
 0x193   : > { %p756_p8 = pnand %p755_p6, %p1114_p13 }
 0x194   : > { %p761_p0 = por %p760_p11, %p759_p12 }
 0x195   : > { %p757_p4 = pneg %p756_p8 }
 0x196   : > { %p763_p3 = por %p762_p10, %p761_p0 }
 0x198   : > { %p764_p7 = pnand %p763_p3, %p757_p4 }
 0x19a   : > { %767 = shalt.err (!%p764_p7)
}
 0x19b   : > { %589 = dma.vmem_to_hbm [thread:$0]  (%p1114_p13), %s1050_s6, 128, %s1048_s7, %s371_s25  }
 0x19c PF: > { %s396_s21 = sand.u32 1, %s802_s15   ;;  %p1115_p9 = scmp.ne.s32.totalorder %s1103_s22, 0 }
 0x19d   : > { %p1116_p2 = scmp.ge.s32.totalorder %s814_s18, 2  ;;  %s397_s20 = scalar_lea.sflag [#allocation4], %s396_s21 }
 0x19f   : > { %p603_p5 = pnand %p1116_p2, %p1115_p9 }
 0x1a1   : > { %797 = dma.done.wait (!%p603_p5), %s397_s20, 128  }
 0x1a2   : > { %799 = vsyncadd (!%p603_p5), %s397_s20, 4294967168  ;;  %p20_p1 = scmp.ge.s32.totalorder %s906_s27, 4   ;;  %s1117_s15 = smov %s806_s16 }
 0x1a3   : > { %s1118_s16 = smov %s810_s17  ;;  %s1119_s17 = smov %s937_s24 }
 0x1a4   : > { %s1120_s18 = smov %s906_s27  ;;  %22 = sbr.rel (!%p20_p1) target bundleno = 9 (0x9), region = 98 }
 0x1ab   :  { %402 = vsyncpa [#allocation3], 1 }
 0x1ac   :  { %404 = vsyncpa [#allocation3 + $0x1], 1 }
 0x1ad   :  { %405 = vsyncpa [#allocation6], 1 }
 0x1ae   :  { %407 = vsyncpa [#allocation6 + $0x1], 1 }
 0x1af   :  { %408 = vsyncpa [#allocation4], 1 }
 0x1b0   :  { %410 = vsyncpa [#allocation4 + $0x1], 1 }

// kernel: tpu_custom_call.1
= control target key start
LH: loop header
LB: loop body
LE: loop exit
PB: predicated region body
PF: predicated region fallthrough
CT: control target
= control target key end

     0   :  { %s1092_s0 = inlined_call_operand.hbm [shape: f32[16,128], index: 0, kind: input, shape index: {}]   ;;  %s1093_s1 = inlined_call_operand.hbm [shape: f32[16,128], index: 1, kind: input, shape index: {}]   ;;  %s1094_s2 = inlined_call_operand.hbm [shape: f32[128,128], index: 2, kind: input, shape index: {}]   ;;  %s1095_s3 = inlined_call_operand.vmem [shape: f32[1,128], index: 3, kind: input, shape index: {}]   ;;  %s1096_s4 = inlined_call_operand.hbm [shape: f32[16,128], index: 4, kind: output, shape index: {}]  }
   0x1   :  { %1101 = sst [smem:[#allocation13_spill]] %s1094_s2 }
   0x2   :  { %9 = vsyncpa [#allocation3], 0 }
   0x3   :  { %11 = vsyncpa [#allocation3 + $0x1], 0 }
   0x4   :  { %12 = vsyncpa [#allocation6], 0 }
   0x5   :  { %14 = vsyncpa [#allocation6 + $0x1], 0 }
   0x6   :  { %15 = vsyncpa [#allocation4], 0 }
   0x7   :  { %17 = vsyncpa [#allocation4 + $0x1], 0  ;;  %s850_s15 = smov 0   ;;  %s852_s16 = smov 0  }
   0x8   :  { %s854_s17 = smov 0   ;;  %s856_s18 = smov 0  }
   0x9 LB: > { %s871_s19 = sadd.s32 4294967295, %s814_s18   ;;  %s486_s20 = sadd.s32 4294967294, %s814_s18   ;;  %s814_s18 = sphi %s856_s18, %s1120_s18   ;;  %s810_s17 = sphi %s854_s17, %s1119_s17   ;;  %s806_s16 = sphi %s852_s16, %s1118_s16   ;;  %s802_s15 = sphi %s850_s15, %s1117_s15  }
   0xa   : > { %p43_p0 = scmp.ne.s32.totalorder %s806_s16, %s802_s15  ;;  %p1097_p1 = scmp.eq.s32.totalorder %s871_s19, 0 }
   0xb   : > { %p141_p3 = scmp.eq.s32.totalorder %s486_s20, 1  ;;  %p487_p5 = scmp.ge.s32.totalorder %s814_s18, 1 }
   0xc   : > { %p880_p4 = por %p1097_p1, %p43_p0  ;;  %p148_p7 = scmp.lt.s32.totalorder %s814_s18, 3 }
   0xd   : > { %p885_p6 = por %p141_p3, %p43_p0  ;;  %s816_s24 = smov [#allocation7]  }
   0xe   : > { %s1102_s21 = scalar_select %p880_p4, 1, 0 }
   0xf   : > { %s1103_s22 = scalar_select %p885_p6, 1, 0 }
  0x10   : > { %p890_p8 = pnand %p487_p5, %p148_p7  ;;  %s160_s25 = sshll.u32 %s816_s24, 4  ;;  %s894_s25 = int_to_ptr.vmem [resolvable:$true] %s160_s25 }
  0x11   : > { %s906_s27 = sadd.s32 1, %s814_s18   ;;  %s30_s28 = sadd.s32 1, %s810_s17 }
  0x12   : > { %s1104_s23 = scalar_select %p890_p8, 1, 0 }
  0x13   : > { %p591_p9 = pneg %p890_p8  ;;  %s27_s29 = ssub.s32 %s814_s18, %s906_s27 }
  0x14   : > { %s1106_s2 = sld [smem:[#allocation13_spill]] }
  0x15   : > { %p901_p11 = pnand %p591_p9, %p1097_p1 }
  0x17   : > { %p654_p13 = pneg %p901_p11 }
  0x1a   : > { %s652_s6 = scalar_lea.hbm %s1106_s2, 2048 }
  0x1b   : > { %p653_p12 = scmp.ne.s32.totalorder %s1106_s2, %s652_s6  ;;  %p659_p5 = scmp.lt.u32.totalorder %s652_s6, %s1106_s2 }
  0x1d   : > { %p655_p0 = pnand %p654_p13, %p653_p12 }
  0x1f   : > { %p656_p3 = pneg %p655_p0 }
  0x21   : > { %p661_p7 = pnand %p659_p5, %p656_p3 }
  0x23   : > { %664 = shalt.err (!%p661_p7)
}
  0x24   : > { %s665_s11 = scalar_lea.vmem %s894_s25, 2048  ;;  %p673_p2 = scmp.lt.s32.totalorder %s894_s25, %s894_s25 }
  0x25   : > { %p666_p9 = scmp.ne.s32.totalorder %s894_s25, %s665_s11  ;;  %p674_p6 = scmp.lt.s32.totalorder %s665_s11, %s665_s11 }
  0x27   : > { %p668_p10 = pnand %p666_p9, %p654_p13  ;;  %p675_p4 = por %p674_p6, %p673_p2 }
  0x29   : > { %p669_p1 = pneg %p668_p10 }
  0x2b   : > { %p676_p8 = pnand %p675_p4, %p669_p1 }
  0x2d   : > { %679 = shalt.err (!%p676_p8)
}
  0x2e   : > { %s817_s12 = smov 128   ;;  %s818_s13 = smov 8  }
  0x2f   : > { %594 = dma.hbm_to_vmem [thread:$0]  (!%p901_p11), %s1106_s2, 2048, %s894_s25, [#allocation6], %s817_s12, %s817_s12, %s818_s13  }
  0x30   : > { %p28_p2 = scmp.eq.s32.totalorder %s27_s29, 0  ;;  %p37_p1 = scmp.ne.s32.totalorder %s810_s17, %s806_s16 }
  0x31   : > { %p38_p4 = scmp.eq.s32.totalorder %s814_s18, 0  ;;  %p607_p6 = scmp.lt.s32.totalorder %s814_s18, 2 }
  0x32   : > { %s937_s24 = scalar_select %p28_p2, %s810_s17, %s30_s28  }
  0x33   : > { %p39_p8 = por %p38_p4, %p37_p1  ;;  %p1107_p10 = scmp.eq.s32.totalorder %s871_s19, 1 }
  0x34   : > { %s177_s5 = sand.u32 1, %s810_s17   ;;  %s491_s6 = sshll.u32 %s814_s18, 7 }
  0x35   : > { %p941_p12 = por %p1107_p10, %p37_p1  ;;  %s947_s7 = sshll.u32 %s177_s5, 3 }
  0x36   : > { %s952_s25 = scalar_lea.hbm %s1092_s0, %s491_s6  ;;  %s181_s28 = scalar_lea.vmem [#allocation2], %s947_s7 }
  0x37   : > { %s1108_s30 = scalar_select %p941_p12, 1, 0 }
  0x38   : > { %s188_s29 = sshll.u32 %s181_s28, 4  ;;  %p955_p11 = pnand %p607_p6, %p39_p8  ;;  %s959_s29 = int_to_ptr.vmem [resolvable:$true] %s188_s29 }
  0x39   : > { %s964_s12 = scalar_lea.hbm %s1093_s1, %s491_s6  ;;  %s178_s13 = scalar_lea.sflag [#allocation3], %s177_s5 }
  0x3a   : > { %s680_s14 = scalar_lea.hbm %s952_s25, 128  ;;  %p682_p0 = pneg %p955_p11 }
  0x3b   : > { %p681_p13 = scmp.ne.s32.totalorder %s952_s25, %s680_s14  ;;  %s685_s8 = scalar_lea.hbm %s1092_s0, 256 }
  0x3c   : > { %p686_p7 = scmp.lt.u32.totalorder %s952_s25, %s1092_s0  ;;  %p687_p9 = scmp.lt.u32.totalorder %s685_s8, %s680_s14 }
  0x3d   : > { %p683_p3 = pnand %p682_p0, %p681_p13  ;;  %p689_p1 = scmp.lt.u32.totalorder %s680_s14, %s952_s25 }
  0x3e   : > { %p688_p2 = por %p687_p9, %p686_p7 }
  0x3f   : > { %p684_p5 = pneg %p683_p3 }
  0x40   : > { %p690_p4 = por %p689_p1, %p688_p2 }
  0x42   : > { %p691_p6 = pnand %p690_p4, %p684_p5 }
  0x44   : > { %694 = shalt.err (!%p691_p6)
}
  0x45   : > { %s695_s5 = scalar_lea.vmem %s959_s29, 128  ;;  %s819_s6 = smov [#allocation2]  }
  0x46   : > { %p696_p8 = scmp.ne.s32.totalorder %s959_s29, %s695_s5  ;;  %s700_s10 = sshll.u32 %s819_s6, 4  ;;  %s701_s10 = int_to_ptr.vmem [resolvable:$false] %s700_s10 }
  0x47   : > { %s702_s2 = scalar_lea.vmem %s701_s10, 256  ;;  %p703_p3 = scmp.lt.s32.totalorder %s959_s29, %s701_s10 }
  0x48   : > { %p698_p10 = pnand %p696_p8, %p682_p0  ;;  %p704_p7 = scmp.lt.s32.totalorder %s702_s2, %s695_s5 }
  0x4a   : > { %p699_p13 = pneg %p698_p10  ;;  %p705_p9 = por %p704_p7, %p703_p3 }
  0x4c   : > { %p706_p2 = pnand %p705_p9, %p699_p13 }
  0x4e   : > { %709 = shalt.err (!%p706_p2)
}
  0x4f   : > { %598 = dma.hbm_to_vmem [thread:$0]  (!%p955_p11), %s952_s25, 128, %s959_s29, %s178_s13  }
  0x50   : > { %s195_s11 = sand.u32 1, %s814_s18   ;;  %s199_s14 = scalar_lea.vmem [#allocation5], %s947_s7 }
  0x51   : > { %s206_s20 = sshll.u32 %s199_s14, 4  ;;  %s196_s26 = scalar_lea.sflag [#allocation6], %s195_s11  ;;  %s207_s20 = int_to_ptr.vmem [resolvable:$true] %s206_s20 }
  0x52   : > { %s710_s8 = scalar_lea.hbm %s964_s12, 128  ;;  %s715_s6 = scalar_lea.hbm %s1093_s1, 256 }
  0x53   : > { %p711_p5 = scmp.ne.s32.totalorder %s964_s12, %s710_s8  ;;  %p716_p6 = scmp.lt.u32.totalorder %s964_s12, %s1093_s1 }
  0x54   : > { %p717_p8 = scmp.lt.u32.totalorder %s715_s6, %s710_s8  ;;  %p719_p13 = scmp.lt.u32.totalorder %s710_s8, %s964_s12 }
  0x55   : > { %p713_p1 = pnand %p711_p5, %p682_p0 }
  0x56   : > { %p718_p10 = por %p717_p8, %p716_p6 }
  0x57   : > { %p714_p4 = pneg %p713_p1 }
  0x58   : > { %p720_p3 = por %p719_p13, %p718_p10 }
  0x5a   : > { %p721_p7 = pnand %p720_p3, %p714_p4 }
  0x5c   : > { %724 = shalt.err (!%p721_p7)
}
  0x5d   : > { %s725_s7 = scalar_lea.vmem %s207_s20, 128  ;;  %s820_s25 = smov [#allocation5]  }
  0x5e   : > { %p726_p9 = scmp.ne.s32.totalorder %s207_s20, %s725_s7  ;;  %s730_s29 = sshll.u32 %s820_s25, 4  ;;  %s731_s29 = int_to_ptr.vmem [resolvable:$false] %s730_s29 }
  0x5f   : > { %s732_s13 = scalar_lea.vmem %s731_s29, 256  ;;  %p733_p1 = scmp.lt.s32.totalorder %s207_s20, %s731_s29 }
  0x60   : > { %p728_p2 = pnand %p726_p9, %p682_p0  ;;  %p734_p12 = scmp.lt.s32.totalorder %s732_s13, %s725_s7 }
  0x62   : > { %p729_p5 = pneg %p728_p2  ;;  %p735_p6 = por %p734_p12, %p733_p1 }
  0x64   : > { %p736_p8 = pnand %p735_p6, %p729_p5 }
  0x66   : > { %739 = shalt.err (!%p736_p8)
}
  0x67   : > { %601 = dma.hbm_to_vmem [thread:$0]  (!%p955_p11), %s964_s12, 128, %s207_s20, %s196_s26  }
  0x68   : > { %p1110_p4 = scmp.ne.s32.totalorder %s1104_s23, 0 }
  0x69   : > { %s1015_s11 = sand.u32 (!%p1110_p4), 1, %s806_s16   ;;  %p1111_p12 = scmp.ne.s32.totalorder (!%p1110_p4), %s1102_s21, 0 }
  0x6a   : > { %215 = sbr.rel (%p1110_p4) target bundleno = 412 (0x19c), region = 36  ;;  %s1018_s14 = sshll.u32 (!%p1110_p4), %s1015_s11, 3 }
  0x6b   : > { %s218_s8 = scalar_lea.sflag (!%p1110_p4), [#allocation3], %s1015_s11  ;;  %s221_s28 = scalar_lea.vmem (!%p1110_p4), [#allocation2], %s1018_s14 }
  0x71   : > { %785 = dma.done.wait (%p1111_p12), %s218_s8, 128  }
  0x72   : > { %787 = vsyncadd (%p1111_p12), %s218_s8, 4294967168  ;;  %s226_s23 = sand.u32 1, %s871_s19   ;;  %s230_s12 = scalar_lea.vmem [#allocation5], %s1018_s14 }
  0x73   : > { %s227_s9 = scalar_lea.sflag [#allocation6], %s226_s23 }
  0x74   : > { %789 = dma.done.wait (%p1111_p12), %s227_s9, 128  }
  0x75   : > { %791 = vsyncadd (%p1111_p12), %s227_s9, 4294967168  ;;  %p1112_p11 = scmp.eq.s32.totalorder %s871_s19, 0 }
  0x77   : > { %793 = dma.done.wait (%p1112_p11), [#allocation6], 2048   ;;  %p1113_p0 = pmov %p1112_p11 }
  0x78   : > { %v821_v0 = vmov 0.0|0.0   ;;  %vm822_vm0 = vmmov 0   ;;  %v823_v1 = vmov 0.0   ;;  %v267_v2 = vld [vmem:[#allocation7] sm:$0xff]  ;;  %v268_v3 = vld [vmem:[#allocation7 + $0x8] sm:$0xff]  ;;  %v269_v4 = vld [vmem:[#allocation7 + $0x10] sm:$0xff] }
  0x79   : > { %795 = vsyncadd (%p1113_p0), [#allocation6], 4294965248  ;;  %557 = vmatprep.subr.bf16.mxu0 %v821_v0  ;;  %554 = vmatprep.mubr.msk.f32.mxu0 %vm822_vm0, %v823_v1  ;;  %v558_v5 = vpack.c.bf16 %v268_v3, %v267_v2  ;;  %v270_v6 = vld [vmem:[#allocation7 + $0x18] sm:$0xff]  ;;  %v271_v8 = vld [vmem:[#allocation7 + $0x20] sm:$0xff]  ;;  %s502_s26 = sshll.u32 %s871_s19, 7  ;;  %s263_s5 = scalar_lea.vmem [#allocation8], %s1018_s14 }
  0x7a   : > { %v561_v7 = vpack.c.bf16 %v270_v6, %v269_v4  ;;  %v272_v9 = vld [vmem:[#allocation7 + $0x28] sm:$0xff]  ;;  %v273_v11 = vld [vmem:[#allocation7 + $0x30] sm:$0xff]  ;;  %v274_v12 = vld [vmem:[#allocation7 + $0x38] sm:$0xff]  ;;  %s384_s6 = sshll.u32 %s263_s5, 4  ;;  %s1048_s7 = scalar_lea.hbm %s1096_s4, %s502_s26  ;;  %s1050_s6 = int_to_ptr.vmem [resolvable:$true] %s384_s6 }
  0x7b   : > { %559 = vmatpush3.bf16.msra.mxu0 %v558_v5  ;;  %v564_v10 = vpack.c.bf16 %v272_v9, %v271_v8  ;;  %v567_v13 = vpack.c.bf16 %v274_v12, %v273_v11  ;;  %v275_v14 = vld [vmem:[#allocation7 + $0x40] sm:$0xff]  ;;  %v276_v15 = vld [vmem:[#allocation7 + $0x48] sm:$0xff]  ;;  %v277_v17 = vld [vmem:[#allocation7 + $0x50] sm:$0xff]  ;;  %s371_s25 = scalar_lea.sflag [#allocation4], %s1015_s11  ;;  %s740_s29 = scalar_lea.vmem %s1050_s6, 128 }
  0x7c   : > { %560 = vmatprep.subr.bf16.mxu0 %v821_v0  ;;  %v570_v16 = vpack.c.bf16 %v276_v15, %v275_v14  ;;  %v278_v18 = vld [vmem:[#allocation7 + $0x58] sm:$0xff]  ;;  %v279_v20 = vld [vmem:[#allocation7 + $0x60] sm:$0xff]  ;;  %v280_v21 = vld [vmem:[#allocation7 + $0x68] sm:$0xff]  ;;  %p741_p10 = scmp.ne.s32.totalorder %s1050_s6, %s740_s29  ;;  %p1114_p13 = scmp.ne.s32.totalorder %s1108_s30, 0 }
  0x7d   : > { %v573_v19 = vpack.c.bf16 %v278_v18, %v277_v17  ;;  %v576_v22 = vpack.c.bf16 %v280_v21, %v279_v20  ;;  %v281_v23 = vld [vmem:[#allocation7 + $0x70] sm:$0xff]  ;;  %v282_v24 = vld [vmem:[#allocation7 + $0x78] sm:$0xff]  ;;  %v264_v26 = vld [vmem:[%s221_s28] sm:$0xff]  ;;  %s824_s19 = smov [#allocation8]  }
  0x7e   : > { %v579_v25 = vpack.c.bf16 %v282_v24, %v281_v23  ;;  %v265_v27 = vld [vmem:[%s230_s12] sm:$0xff]  ;;  %v499_v29 = vld [vmem:[%s1095_s3] ss:$0 sm:$0xff]  ;;  %p742_p3 = pnand %p741_p10, %p1114_p13  ;;  %s744_s13 = sshll.u32 %s824_s19, 4  ;;  %s745_s13 = int_to_ptr.vmem [resolvable:$false] %s744_s13 }
  0x7f   : > { %562 = vmatpush3.bf16.msra.mxu0 %v561_v7  ;;  %v266_v28 = vadd.f32 %v265_v27, %v264_v26  ;;  %v366_v36 = vsub.f32 %v264_v26, %v265_v27  ;;  %s746_s14 = scalar_lea.vmem %s745_s13, 256  ;;  %p747_p9 = scmp.lt.s32.totalorder %s1050_s6, %s745_s13 }
  0x80   : > { %563 = vmatprep.subr.bf16.mxu0 %v821_v0  ;;  %p743_p7 = pneg %p742_p3  ;;  %p748_p2 = scmp.lt.s32.totalorder %s746_s14, %s740_s29 }
  0x82   : > { %p749_p5 = por %p748_p2, %p747_p9 }
  0x83   : > { %565 = vmatpush3.bf16.msra.mxu0 %v564_v10 }
  0x84   : > { %566 = vmatprep.subr.bf16.mxu0 %v821_v0  ;;  %p750_p1 = pnand %p749_p5, %p743_p7 }
  0x87   : > { %568 = vmatpush3.bf16.msra.mxu0 %v567_v13 }
  0x88   : > { %569 = vmatprep.subr.bf16.mxu0 %v821_v0 }
  0x8b   : > { %571 = vmatpush3.bf16.msra.mxu0 %v570_v16 }
  0x8c   : > { %572 = vmatprep.subr.bf16.mxu0 %v821_v0 }
  0x8f   : > { %574 = vmatpush3.bf16.msra.mxu0 %v573_v19 }
  0x90   : > { %575 = vmatprep.subr.bf16.mxu0 %v821_v0 }
  0x93   : > { %577 = vmatpush3.bf16.msra.mxu0 %v576_v22 }
  0x94   : > { %578 = vmatprep.subr.bf16.mxu0 %v821_v0 }
  0x97   : > { %580 = vmatpush3.bf16.msra.mxu0 %v579_v25 }
  0x9a   : > { %555 = vmatmul.mubr.f32.vlgmr.msra.gmra.mrb[0].mxu0 %v266_v28 }
 0x16d   : > { %v356_v30 = vpop.f32.mrb[0].mxu0 }
 0x16e   : > { %v357_v31 = vadd.f32 %v499_v29, %v356_v30  ;;  %v556_v32 = vpop.f32.mrb[1].mxu0 }
 0x170   : > { %v500_v33 = vmul.f32 -1.442695, %v357_v31 }
 0x172   : > { %648 = vpow2.f32 %v500_v33 }
 0x17c   : > { %v649_v34 = vpop.eup %648 }
 0x17d   : > { %v363_v35 = vadd.f32 1.0, %v649_v34 }
 0x17f   : > { %650 = vrcp.f32 %v363_v35 }
 0x189   : > { %v651_v37 = vpop.eup %650 }
 0x18a   : > { %v367_v38 = vmul.f32 %v651_v37, %v366_v36 }
 0x18c   : > { %v368_v39 = vadd.f32 %v367_v38, %v265_v27 }
 0x18e   : > { %369 = vst [vmem:[%s263_s5] sm:$0xff] %v368_v39 }
 0x18f   : > { %753 = shalt.err (!%p750_p1)
}
 0x190   : > { %s754_s11 = scalar_lea.hbm %s1048_s7, 128  ;;  %s758_s23 = scalar_lea.hbm %s1096_s4, 256 }
 0x191   : > { %p755_p6 = scmp.ne.s32.totalorder %s1048_s7, %s754_s11  ;;  %p759_p12 = scmp.lt.u32.totalorder %s1048_s7, %s1096_s4 }
 0x192   : > { %p760_p11 = scmp.lt.u32.totalorder %s758_s23, %s754_s11  ;;  %p762_p10 = scmp.lt.u32.totalorder %s754_s11, %s1048_s7 }
 0x193   : > { %p756_p8 = pnand %p755_p6, %p1114_p13 }
 0x194   : > { %p761_p0 = por %p760_p11, %p759_p12 }
 0x195   : > { %p757_p4 = pneg %p756_p8 }
 0x196   : > { %p763_p3 = por %p762_p10, %p761_p0 }
 0x198   : > { %p764_p7 = pnand %p763_p3, %p757_p4 }
 0x19a   : > { %767 = shalt.err (!%p764_p7)
}
 0x19b   : > { %589 = dma.vmem_to_hbm [thread:$0]  (%p1114_p13), %s1050_s6, 128, %s1048_s7, %s371_s25  }
 0x19c PF: > { %s396_s21 = sand.u32 1, %s802_s15   ;;  %p1115_p9 = scmp.ne.s32.totalorder %s1103_s22, 0 }
 0x19d   : > { %p1116_p2 = scmp.ge.s32.totalorder %s814_s18, 2  ;;  %s397_s20 = scalar_lea.sflag [#allocation4], %s396_s21 }
 0x19f   : > { %p603_p5 = pnand %p1116_p2, %p1115_p9 }
 0x1a1   : > { %797 = dma.done.wait (!%p603_p5), %s397_s20, 128  }
 0x1a2   : > { %799 = vsyncadd (!%p603_p5), %s397_s20, 4294967168  ;;  %p20_p1 = scmp.ge.s32.totalorder %s906_s27, 4   ;;  %s1117_s15 = smov %s806_s16 }
 0x1a3   : > { %s1118_s16 = smov %s810_s17  ;;  %s1119_s17 = smov %s937_s24 }
 0x1a4   : > { %s1120_s18 = smov %s906_s27  ;;  %22 = sbr.rel (!%p20_p1) target bundleno = 9 (0x9), region = 98 }
 0x1ab   :  { %402 = vsyncpa [#allocation3], 1 }
 0x1ac   :  { %404 = vsyncpa [#allocation3 + $0x1], 1 }
 0x1ad   :  { %405 = vsyncpa [#allocation6], 1 }
 0x1ae   :  { %407 = vsyncpa [#allocation6 + $0x1], 1 }
 0x1af   :  { %408 = vsyncpa [#allocation4], 1 }
 0x1b0   :  { %410 = vsyncpa [#allocation4 + $0x1], 1 }

</bundles_post_ra>
